<compile_context>
chip_gen: v7x
topology: tpu7x:2x2x1
jax: 0.10.0
libtpu: 0.0.40
codegen_flags: <defaults>
</compile_context>

<pallas_src>
import jax
import jax.numpy as jnp
from jax.experimental import pallas as pl
from jax.experimental.pallas import tpu as pltpu


# ---------------------------------------------------------------------------
# Kernel bodies (weight/bias enter as (1, tn) rows -> free VPU row-broadcast).
# ---------------------------------------------------------------------------
def _ewl_kernel_wb(x_ref, w_ref, b_ref, o_ref):
    o_ref[...] = (x_ref[...] * w_ref[...] + b_ref[...]).astype(o_ref.dtype)


def _ewl_kernel_w(x_ref, w_ref, o_ref):
    o_ref[...] = (x_ref[...] * w_ref[...]).astype(o_ref.dtype)


def _ewl_kernel_b(x_ref, b_ref, o_ref):
    o_ref[...] = (x_ref[...] + b_ref[...]).astype(o_ref.dtype)


# ---------------------------------------------------------------------------
# Wrapper
# ---------------------------------------------------------------------------
def elementwise_linear(x, weight=None, bias=None, *, tm=None, tn=None, inplace=False):
    """Pallas implementation of ElementWiseLinear.forward.

    x:      (..., size)
    weight: (1, size) or None (module's weight=False -> no scale)
    bias:   (1, size) or None (module's bias=False  -> no shift)
    """
    # Identity module: nothing to do (matches PyTorch returning x unchanged).
    if weight is None and bias is None:
        return x

    orig_shape = x.shape
    size = orig_shape[-1]
    x2 = x.reshape(-1, size)
    N = x2.shape[0]

    params = []
    dtypes = [x.dtype]
    if weight is not None:
        assert weight.shape == (1, size)
        params.append(weight)
        dtypes.append(weight.dtype)
    if bias is not None:
        assert bias.shape == (1, size)
        params.append(bias)
        dtypes.append(bias.dtype)

    if weight is not None and bias is not None:
        kernel = _ewl_kernel_wb
    elif weight is not None:
        kernel = _ewl_kernel_w
    else:
        kernel = _ewl_kernel_b

    # Match PyTorch-style dtype promotion instead of silently downcasting.
    out_dtype = jnp.result_type(*dtypes)

    itemsize = max(jnp.dtype(x.dtype).itemsize, jnp.dtype(out_dtype).itemsize)
    # Sublane packing: 8 rows/vreg for 4-byte types, 16 for bf16, 32 for 1-byte.
    sublane = max(8, 32 // itemsize)

    # ---- Feature (lane) tile: lane-dense, multiple of 128 (or full dim). ----
    if size < 128:
        tn = size                     # full-dim block (allowed by Pallas)
    else:
        if tn is None:
            tn = size if size <= 2048 else 512
        tn = min(tn, (size // 128) * 128)
        tn = max(128, (tn // 128) * 128)

    # ---- Row tile: as big as a ~2 MiB per-block budget allows. --------------
    # Double-buffered x + out blocks then stay well under the 32 MiB scoped
    # VMEM limit on every generation (including v7x's halved VMEM).
    if N < sublane:
        tm = N                        # full-dim block (allowed by Pallas)
    else:
        if tm is None:
            budget = 2 * 1024 * 1024
            tm = budget // (tn * itemsize)
        tm = min(tm, 2048, N)
        tm = max(sublane, (tm // sublane) * sublane)

    grid = (pl.cdiv(N, tm), pl.cdiv(size, tn))

    x_spec = pl.BlockSpec((tm, tn), lambda i, j: (i, j))
    p_spec = pl.BlockSpec((1, tn), lambda i, j: (0, j))   # weight / bias rows
    in_specs = [x_spec] + [p_spec] * len(params)

    # In-place mode: alias x to the output buffer (only valid if dtypes match).
    aliases = {0: 0} if (inplace and x.dtype == out_dtype) else {}

    out2 = pl.pallas_call(
        kernel,
        out_shape=jax.ShapeDtypeStruct((N, size), out_dtype),
        grid_spec=pltpu.PrefetchScalarGridSpec(
            num_scalar_prefetch=0,
            grid=grid,
            in_specs=in_specs,
            out_specs=pl.BlockSpec((tm, tn), lambda i, j: (i, j)),
        ),
        input_output_aliases=aliases,
        compiler_params=pltpu.CompilerParams(
            dimension_semantics=("parallel", "parallel"),
            vmem_limit_bytes=32 * 1024 * 1024,
        ),
    )(x2, *params)

    return out2.reshape(orig_shape[:-1] + (size,))


if __name__ == "__main__":
    key = jax.random.PRNGKey(0)
    k1, k2, k3, kw = jax.random.split(key, 4)

    # --- Check 1: small, tile-aligned shapes (N=16, size=128), f32. ----------
    N, size = 16, 128
    x = jax.random.normal(k1, (N, size), dtype=jnp.float32)
    weight = jnp.ones((1, size), dtype=jnp.float32)   # reset_parameters(): ones
    bias = jnp.zeros((1, size), dtype=jnp.float32)    # reset_parameters(): zeros
    out = jax.block_until_ready(elementwise_linear(x, weight, bias))
    ref = x * weight + bias
    assert out.shape == x.shape and out.dtype == x.dtype
    assert jnp.allclose(out, ref, atol=1e-6, rtol=1e-6)

    # --- Check 2: non-divisible rows + multi-tile 2-D grid (masked last block).
    N2, size2 = 200, 384
    x2 = jax.random.normal(k2, (N2, size2), dtype=jnp.float32)
    w2 = 1.0 + 0.1 * jax.random.normal(kw, (1, size2), dtype=jnp.float32)
    b2 = 0.1 * jax.random.normal(k3, (1, size2), dtype=jnp.float32)
    out2 = jax.block_until_ready(elementwise_linear(x2, w2, b2, tm=64, tn=128))
    ref2 = x2 * w2 + b2
    assert jnp.allclose(out2, ref2, atol=1e-5, rtol=1e-5)

    # --- Check 3: bf16 activations with f32 params (dtype promotion). --------
    x3 = jax.random.normal(k3, (32, 256), dtype=jnp.bfloat16)
    w3 = jnp.ones((1, 256), dtype=jnp.float32)
    b3 = jnp.zeros((1, 256), dtype=jnp.float32)
    out3 = jax.block_until_ready(elementwise_linear(x3, w3, b3))
    ref3 = x3.astype(jnp.float32) * w3 + b3
    assert out3.dtype == jnp.float32
    assert jnp.allclose(out3, ref3, atol=1e-2, rtol=1e-2)

    # --- Check 4: weight=False / bias=False module variants + narrow size. ---
    x4 = jax.random.normal(k1, (24, 96), dtype=jnp.float32)   # size < 128
    w4 = 1.0 + 0.1 * jax.random.normal(kw, (1, 96), dtype=jnp.float32)
    b4 = 0.1 * jax.random.normal(k2, (1, 96), dtype=jnp.float32)
    out_w = jax.block_until_ready(elementwise_linear(x4, w4, None))     # bias=False
    out_b = jax.block_until_ready(elementwise_linear(x4, None, b4))     # weight=False
    out_id = elementwise_linear(x4, None, None)                          # identity
    assert jnp.allclose(out_w, x4 * w4, atol=1e-6, rtol=1e-6)
    assert jnp.allclose(out_b, x4 + b4, atol=1e-6, rtol=1e-6)
    assert out_id is x4

    # --- Check 5: inplace=True path (aliased output) + 3-D input. ------------
    x5 = jax.random.normal(k2, (2, 20, 128), dtype=jnp.float32)
    w5 = 1.0 + 0.1 * jax.random.normal(kw, (1, 128), dtype=jnp.float32)
    b5 = 0.1 * jax.random.normal(k3, (1, 128), dtype=jnp.float32)
    out5 = jax.block_until_ready(elementwise_linear(x5, w5, b5, inplace=True))
    assert out5.shape == x5.shape
    assert jnp.allclose(out5, x5 * w5 + b5, atol=1e-5, rtol=1e-5)

    print("KERNEL_OK")
</pallas_src>

<mosaic_0001>
module attributes {stable_mosaic.version = 11 : i64} {
  func.func @_ewl_kernel_wb(%arg0: i32, %arg1: i32, %arg2: memref<16x128xf32, #tpu.memory_space<vmem>>, %arg3: memref<1x128xf32, #tpu.memory_space<vmem>>, %arg4: memref<1x128xf32, #tpu.memory_space<vmem>>, %arg5: memref<16x128xf32, #tpu.memory_space<vmem>>) attributes {dimension_semantics = [#tpu.dimension_semantics<parallel>, #tpu.dimension_semantics<parallel>], iteration_bounds = array<i64: 1, 1>, scalar_prefetch = 0 : i64, scratch_operands = 0 : i64, tpu.core_type = #tpu.core_type<tc>, window_params = [{transform_indices = @transform_0, window_bounds = array<i64: 16, 128>}, {transform_indices = @transform_1, window_bounds = array<i64: 1, 128>}, {transform_indices = @transform_2, window_bounds = array<i64: 1, 128>}, {transform_indices = @transform_3, window_bounds = array<i64: 16, 128>}]} {
    %c0 = arith.constant 0 : index
    %c0_0 = arith.constant 0 : index
    %0 = vector.load %arg2[%c0, %c0_0] : memref<16x128xf32, #tpu.memory_space<vmem>>, vector<16x128xf32>
    %c0_1 = arith.constant 0 : index
    %c0_2 = arith.constant 0 : index
    %1 = vector.load %arg3[%c0_1, %c0_2] : memref<1x128xf32, #tpu.memory_space<vmem>>, vector<1x128xf32>
    %2 = vector.broadcast %1 : vector<1x128xf32> to vector<16x128xf32>
    %3 = arith.mulf %0, %2 : vector<16x128xf32>
    %c0_3 = arith.constant 0 : index
    %c0_4 = arith.constant 0 : index
    %4 = vector.load %arg4[%c0_3, %c0_4] : memref<1x128xf32, #tpu.memory_space<vmem>>, vector<1x128xf32>
    %5 = vector.broadcast %4 : vector<1x128xf32> to vector<16x128xf32>
    %6 = arith.addf %3, %5 : vector<16x128xf32>
    %c0_5 = arith.constant 0 : index
    %c0_6 = arith.constant 0 : index
    %7 = vector.load %arg5[%c0_5, %c0_6] : memref<16x128xf32, #tpu.memory_space<vmem>>, vector<16x128xf32>
    tpu.vector_store %arg5[%c0_5, %c0_6], %6 {strides = array<i32>} : memref<16x128xf32, #tpu.memory_space<vmem>>, vector<16x128xf32>,
    return
  }
  func.func @transform_0(%arg0: i32, %arg1: i32) -> (i32, i32) {
    %c0_i32 = arith.constant 0 : i32
    return %arg0, %arg1 : i32, i32
  }
  func.func @transform_1(%arg0: i32, %arg1: i32) -> (i32, i32) {
    %c0_i32 = arith.constant 0 : i32
    %c0_i32_0 = arith.constant 0 : i32
    return %c0_i32, %arg1 : i32, i32
  }
  func.func @transform_2(%arg0: i32, %arg1: i32) -> (i32, i32) {
    %c0_i32 = arith.constant 0 : i32
    %c0_i32_0 = arith.constant 0 : i32
    return %c0_i32, %arg1 : i32, i32
  }
  func.func @transform_3(%arg0: i32, %arg1: i32) -> (i32, i32) {
    %c0_i32 = arith.constant 0 : i32
    return %arg0, %arg1 : i32, i32
  }
}

</mosaic_0001>

<bundles_post_ra>
// kernel: tpu_custom_call.1
= control target key start
LH: loop header
LB: loop body
LE: loop exit
PB: predicated region body
PF: predicated region fallthrough
CT: control target
= control target key end

     0   :  { %8 = vsyncpa [#allocation3], 0  ;;  %s182_s0 = inlined_call_operand.hbm [shape: f32[16,128], index: 0, kind: input, shape index: {}]   ;;  %s183_s1 = inlined_call_operand.vmem [shape: f32[1,128], index: 1, kind: input, shape index: {}]   ;;  %s184_s2 = inlined_call_operand.vmem [shape: f32[1,128], index: 2, kind: input, shape index: {}]   ;;  %s185_s3 = inlined_call_operand.hbm [shape: f32[16,128], index: 3, kind: output, shape index: {}]  }
   0x1   :  { %9 = vsyncpa [#allocation4], 0  ;;  %s122_s12 = smov [#allocation2]   ;;  %s74_s16 = scalar_lea.hbm %s182_s0, 256 }
   0x2   :  { %s15_s13 = sshll.u32 %s122_s12, 4  ;;  %p75_p0 = scmp.ne.s32.totalorder %s182_s0, %s74_s16  ;;  %s16_s13 = int_to_ptr.vmem [resolvable:$true] %s15_s13 }
   0x3   :  { %p78_p1 = scmp.lt.u32.totalorder %s74_s16, %s182_s0 }
   0x5   :  { %p80_p2 = pnand %p78_p1, %p75_p0 }
   0x7   :  { %83 = shalt.err (!%p80_p2)
}
   0x8   :  { %s84_s21 = scalar_lea.vmem %s16_s13, 256  ;;  %p89_p4 = scmp.lt.s32.totalorder %s16_s13, %s16_s13 }
   0x9   :  { %p85_p3 = scmp.ne.s32.totalorder %s16_s13, %s84_s21  ;;  %p90_p5 = scmp.lt.s32.totalorder %s84_s21, %s84_s21 }
   0xb   :  { %p91_p6 = por %p90_p5, %p89_p4 }
   0xd   :  { %p92_p7 = pnand %p91_p6, %p85_p3 }
   0xf   :  { %95 = shalt.err (!%p92_p7)
}
  0x10   :  { %s123_s22 = smov 128   ;;  %s124_s23 = smov 8  }
  0x11   :  { %21 = dma.hbm_to_vmem [thread:$0]  %s182_s0, 256, %s16_s13, [#allocation3], %s123_s22, %s123_s22, %s124_s23  }
  0x12   :  { %118 = dma.done.wait [#allocation3], 256  }
  0x13   :  { %119 = vsyncadd [#allocation3], 4294967040  ;;  %v29_v0 = vld [vmem:[#allocation2] sm:$0xff]  ;;  %v30_v4 = vld [vmem:[#allocation2 + $0x8] sm:$0xff]  ;;  %s125_s30 = smov [#allocation5]  }
  0x14   :  { %v68_v1 = vld [vmem:[%s183_s1] ss:$0 sm:$0xff]  ;;  %s56_s4 = sshll.u32 %s125_s30, 4  ;;  %s57_s4 = int_to_ptr.vmem [resolvable:$true] %s56_s4 }
  0x15   :  { %v69_v2 = vld [vmem:[%s184_s2] ss:$0 sm:$0xff]  ;;  %v38_v3 = vmul.f32 %v68_v1, %v29_v0  ;;  %v39_v5 = vmul.f32 %v68_v1, %v30_v4  ;;  %s96_s0 = scalar_lea.vmem %s57_s4, 256  ;;  %p101_p9 = scmp.lt.s32.totalorder %s57_s4, %s57_s4 }
  0x16   :  { %p97_p8 = scmp.ne.s32.totalorder %s57_s4, %s96_s0  ;;  %p102_p10 = scmp.lt.s32.totalorder %s96_s0, %s96_s0 }
  0x17   :  { %v47_v6 = vadd.f32 %v69_v2, %v38_v3  ;;  %v48_v7 = vadd.f32 %v69_v2, %v39_v5 }
  0x18   :  { %p103_p11 = por %p102_p10, %p101_p9 }
  0x19   :  { %49 = vst [vmem:[#allocation5] sm:$0xff] %v47_v6  ;;  %50 = vst [vmem:[#allocation5 + $0x8] sm:$0xff] %v48_v7 }
  0x1a   :  { %p104_p12 = pnand %p103_p11, %p97_p8 }
  0x1c   :  { %107 = shalt.err (!%p104_p12)
}
  0x1d   :  { %s108_s2 = scalar_lea.hbm %s185_s3, 256 }
  0x1e   :  { %p109_p13 = scmp.ne.s32.totalorder %s185_s3, %s108_s2  ;;  %p112_p0 = scmp.lt.u32.totalorder %s108_s2, %s185_s3 }
  0x20   :  { %p114_p1 = pnand %p112_p0, %p109_p13 }
  0x22   :  { %117 = shalt.err (!%p114_p1)
}
  0x23   :  { %62 = dma.vmem_to_hbm [thread:$0]  %s57_s4, 256, %s185_s3, [#allocation4], %s123_s22, %s123_s22, %s124_s23  }
  0x24   :  { %120 = dma.done.wait [#allocation4], 256  }
  0x25   :  { %121 = vsyncadd [#allocation4], 4294967040 }
  0x26   :  { %66 = vsyncpa [#allocation3], 1 }
  0x27   :  { %67 = vsyncpa [#allocation4], 1 }

</bundles_post_ra>
